<compile_context>
chip_gen: v7x
topology: tpu7x:2x2x1
jax: 0.10.0
libtpu: 0.0.40
codegen_flags: <defaults>
</compile_context>

<pallas_src>
import jax
import jax.numpy as jnp
from jax.experimental import pallas as pl
from jax.experimental.pallas import tpu as pltpu


def fusion_kernel(x_ref, ws_ref, bl_ref, expand_ref, wh_ref, bh_ref, o_ref):
    x = x_ref[...]                                              # (Gb, M*C) lane-dense
    bl = bl_ref[0, 0]                                           # scalar from SMEM

    # Per-fused-token scores with one MXU matmul against the block-diagonal
    # weight (M*C, M):  scores[:, m] = x_m . w_layer + b_layer.
    scores = jnp.dot(x, ws_ref[...],
                     preferred_element_type=jnp.float32) + bl   # (Gb, M)

    # Numerically-stable softmax over the M fused tokens, on one small tile.
    mx = jnp.max(scores, axis=-1, keepdims=True)
    es = jnp.exp(scores - mx)
    att = es / jnp.sum(es, axis=-1, keepdims=True)              # (Gb, M), exact divide

    # Expand att -> (Gb, M*C) with a tiny constant 0/1 MXU matmul, then fold the
    # pooling into the head:  out = (x * att_exp) @ tile(w_head, (M, 1)) + b_head.
    att_exp = jnp.dot(att, expand_ref[...],
                      preferred_element_type=jnp.float32)       # (Gb, M*C)
    weighted = x * att_exp                                      # one lane-dense VPU mul
    out = jnp.dot(weighted, wh_ref[...],
                  preferred_element_type=jnp.float32)           # (Gb, num_classes) MXU
    o_ref[...] = (out + bh_ref[...]).astype(o_ref.dtype)


def _pick_block_rows(G, row_bytes, vmem_block_budget=2 * 1024 * 1024):
    """Rows (batch*seq positions) per grid step.

    The (Gb, M*C) x block is double-buffered by the pipeline; ~2 MiB blocks
    already reach ~85%+ of the HBM roofline on v6e and keep the footprint well
    under the scoped-VMEM defaults of every generation (v5e 16 MiB, v7x 32 MiB).
    Always a multiple of 8 (dense sublanes); the wrapper pads G up to a multiple
    of the result, so there is no full-extent fallback.  The grid is kept >= 2
    steps when possible so v7x's second TensorCore gets work.
    """
    g8 = pl.cdiv(G, 8) * 8
    cap = max(8, (vmem_block_budget // max(row_bytes, 1)) // 8 * 8)
    n_steps = pl.cdiv(g8, cap)
    if n_steps < 2 and g8 >= 16:
        n_steps = 2
    return pl.cdiv(pl.cdiv(g8, n_steps), 8) * 8


def fusion_layer(x, w_layer, b_layer, w_head, b_head, *, sequence_length):
    """x: (N, T, C) with T = L * M (channel-last, matching the PyTorch input).
    Returns (N, L, num_classes)."""
    N, T, C = x.shape
    L = sequence_length
    assert T % L == 0
    M = T // L
    K = M * C
    num_classes = w_head.shape[1]
    G = N * L                                       # total (batch, seq) rows

    dt = x.dtype
    # FREE contiguous reshape (no transpose, no extra HBM round-trip of x).
    x_packed = x.reshape(G, K)

    # Block-diagonal score weight: ws[m*C + c, m] = w_layer[c], zeros elsewhere.
    ws = jnp.kron(jnp.eye(M, dtype=dt), w_layer.astype(dt).reshape(C, 1))   # (K, M)
    # 0/1 expansion matrix: expand[m, m*C:(m+1)*C] = 1.
    expand = jnp.repeat(jnp.eye(M, dtype=dt), C, axis=1)                    # (M, K)
    # Head weight replicated over the M fused tokens.
    wh_rep = jnp.tile(w_head.astype(dt), (M, 1))                            # (K, num_classes)

    bl2 = b_layer.reshape(1, 1).astype(jnp.float32)
    bh2 = b_head.reshape(1, num_classes).astype(jnp.float32)

    Gb = _pick_block_rows(G, K * dt.itemsize)
    n_steps = pl.cdiv(G, Gb)
    G_pad = n_steps * Gb
    if G_pad != G:
        # Zero padded rows are harmless (they produce b_head) and sliced off below.
        x_packed = jnp.pad(x_packed, ((0, G_pad - G), (0, 0)))

    out = pl.pallas_call(
        fusion_kernel,
        out_shape=jax.ShapeDtypeStruct((G_pad, num_classes), x.dtype),
        grid_spec=pltpu.PrefetchScalarGridSpec(
            num_scalar_prefetch=0,
            grid=(n_steps,),
            in_specs=[
                pl.BlockSpec((Gb, K), lambda i: (i, 0)),                    # x (lane-dense)
                pl.BlockSpec((K, M), lambda i: (0, 0)),                     # block-diag Ws
                pl.BlockSpec(memory_space=pltpu.MemorySpace.SMEM),          # b_layer scalar
                pl.BlockSpec((M, K), lambda i: (0, 0)),                     # expand matrix
                pl.BlockSpec((K, num_classes), lambda i: (0, 0)),           # tiled w_head
                pl.BlockSpec((1, num_classes), lambda i: (0, 0)),           # b_head
            ],
            out_specs=pl.BlockSpec((Gb, num_classes), lambda i: (i, 0)),
        ),
        compiler_params=pltpu.CompilerParams(
            dimension_semantics=("parallel",)),
    )(x_packed, ws, bl2, expand, wh_rep, bh2)

    return out[:G].reshape(N, L, num_classes)


def fusion_layer_ref(x, w_layer, b_layer, w_head, b_head, *, sequence_length):
    """Pure-JAX reference mirroring the PyTorch forward."""
    N, T, C = x.shape
    L = sequence_length
    M = T // L
    scores = (x @ w_layer.reshape(C, 1) + b_layer).squeeze(-1).reshape(N, L, M)
    att = jax.nn.softmax(scores, axis=2)
    xr = x.reshape(N, L, M, C)
    fused = jnp.sum(xr * att[..., None], axis=-2)
    return fused @ w_head + b_head


if __name__ == "__main__":
    # Small shapes consistent with the module:
    #   num_features C = 32, num_classes = 16, sequence_length L = 8,
    #   M = 4 tokens fused per sequence step, batch N = 2.
    N, L, M, C, NUM_CLASSES = 2, 8, 4, 32, 16
    T = L * M

    key = jax.random.PRNGKey(0)
    kx, kwl, kbl, kwh, kbh = jax.random.split(key, 5)

    x = jax.random.normal(kx, (N, T, C), dtype=jnp.float32)
    # Deterministic parameter init (nn.Linear-style shapes).
    w_layer = jax.random.normal(kwl, (C,), dtype=jnp.float32) * 0.1     # Linear(C, 1)
    b_layer = jax.random.normal(kbl, (1,), dtype=jnp.float32) * 0.1
    w_head = jax.random.normal(kwh, (C, NUM_CLASSES), dtype=jnp.float32) * 0.1
    b_head = jax.random.normal(kbh, (NUM_CLASSES,), dtype=jnp.float32) * 0.1

    out = fusion_layer(x, w_layer, b_layer, w_head, b_head, sequence_length=L)
    out = jax.block_until_ready(out)

    ref = fusion_layer_ref(x, w_layer, b_layer, w_head, b_head, sequence_length=L)
    assert out.shape == (N, L, NUM_CLASSES)
    # Tolerance accounts for MXU f32 matmul precision (scores + head now on MXU);
    # the softmax divide itself is exact.
    assert jnp.allclose(out, ref, atol=2e-3, rtol=2e-3)

    print("KERNEL_OK")
</pallas_src>

<mosaic_0001>
module attributes {stable_mosaic.version = 11 : i64} {
  func.func @fusion_kernel(%arg0: i32, %arg1: memref<8x128xf32, #tpu.memory_space<vmem>>, %arg2: memref<128x4xf32, #tpu.memory_space<vmem>>, %arg3: memref<1x1xf32, #tpu.memory_space<smem>>, %arg4: memref<4x128xf32, #tpu.memory_space<vmem>>, %arg5: memref<128x16xf32, #tpu.memory_space<vmem>>, %arg6: memref<1x16xf32, #tpu.memory_space<vmem>>, %arg7: memref<8x16xf32, #tpu.memory_space<vmem>>) attributes {dimension_semantics = [#tpu.dimension_semantics<parallel>], iteration_bounds = array<i64: 2>, scalar_prefetch = 0 : i64, scratch_operands = 0 : i64, tpu.core_type = #tpu.core_type<tc>, window_params = [{transform_indices = @transform_0, window_bounds = array<i64: 8, 128>}, {pipeline_mode = #tpu.pipeline_mode<synchronous>, transform_indices = @transform_1, window_bounds = array<i64: 128, 4>}, {transform_indices = @transform_2, window_bounds = array<i64: 1, 1>}, {pipeline_mode = #tpu.pipeline_mode<synchronous>, transform_indices = @transform_3, window_bounds = array<i64: 4, 128>}, {pipeline_mode = #tpu.pipeline_mode<synchronous>, transform_indices = @transform_4, window_bounds = array<i64: 128, 16>}, {pipeline_mode = #tpu.pipeline_mode<synchronous>, transform_indices = @transform_5, window_bounds = array<i64: 1, 16>}, {transform_indices = @transform_6, window_bounds = array<i64: 8, 16>}]} {
    %c0 = arith.constant 0 : index
    %c0_0 = arith.constant 0 : index
    %0 = vector.load %arg1[%c0, %c0_0] : memref<8x128xf32, #tpu.memory_space<vmem>>, vector<8x128xf32>
    %c0_1 = arith.constant 0 : index
    %c0_2 = arith.constant 0 : index
    %1 = memref.load %arg3[%c0_1, %c0_2] : memref<1x1xf32, #tpu.memory_space<smem>>
    %c0_3 = arith.constant 0 : index
    %c0_4 = arith.constant 0 : index
    %2 = vector.load %arg2[%c0_3, %c0_4] : memref<128x4xf32, #tpu.memory_space<vmem>>, vector<128x4xf32>
    %cst = arith.constant dense<0.000000e+00> : vector<8x4xf32>
    %3 = tpu.matmul %0, %2, %cst {dimension_numbers = #tpu.dot_dimension_numbers<[1], [0], [0], [1], [0, 0, 1, 1], [], []>} : vector<8x128xf32>, vector<128x4xf32>, vector<8x4xf32> -> vector<8x4xf32>
    %4 = vector.broadcast %1 : f32 to vector<8x4xf32>
    %5 = arith.addf %3, %4 : vector<8x4xf32>
    %cst_5 = arith.constant dense<0xFF800000> : vector<8xf32>
    %6 = vector.multi_reduction <maximumf>, %5, %cst_5 [1] : vector<8x4xf32> to vector<8xf32>
    %7 = vector.shape_cast %6 : vector<8xf32> to vector<8x1xf32>
    %8 = vector.broadcast %7 : vector<8x1xf32> to vector<8x4xf32>
    %9 = arith.subf %5, %8 : vector<8x4xf32>
    %10 = math.exp %9 : vector<8x4xf32>
    %cst_6 = arith.constant dense<0.000000e+00> : vector<8xf32>
    %11 = vector.multi_reduction <add>, %10, %cst_6 [1] : vector<8x4xf32> to vector<8xf32>
    %12 = vector.shape_cast %11 : vector<8xf32> to vector<8x1xf32>
    %13 = vector.broadcast %12 : vector<8x1xf32> to vector<8x4xf32>
    %14 = arith.divf %10, %13 : vector<8x4xf32>
    %c0_7 = arith.constant 0 : index
    %c0_8 = arith.constant 0 : index
    %15 = vector.load %arg4[%c0_7, %c0_8] : memref<4x128xf32, #tpu.memory_space<vmem>>, vector<4x128xf32>
    %cst_9 = arith.constant dense<0.000000e+00> : vector<8x128xf32>
    %16 = tpu.matmul %14, %15, %cst_9 {dimension_numbers = #tpu.dot_dimension_numbers<[1], [0], [0], [1], [0, 0, 1, 1], [], []>} : vector<8x4xf32>, vector<4x128xf32>, vector<8x128xf32> -> vector<8x128xf32>
    %17 = arith.mulf %0, %16 : vector<8x128xf32>
    %c0_10 = arith.constant 0 : index
    %c0_11 = arith.constant 0 : index
    %18 = vector.load %arg5[%c0_10, %c0_11] : memref<128x16xf32, #tpu.memory_space<vmem>>, vector<128x16xf32>
    %cst_12 = arith.constant dense<0.000000e+00> : vector<8x16xf32>
    %19 = tpu.matmul %17, %18, %cst_12 {dimension_numbers = #tpu.dot_dimension_numbers<[1], [0], [0], [1], [0, 0, 1, 1], [], []>} : vector<8x128xf32>, vector<128x16xf32>, vector<8x16xf32> -> vector<8x16xf32>
    %c0_13 = arith.constant 0 : index
    %c0_14 = arith.constant 0 : index
    %20 = vector.load %arg6[%c0_13, %c0_14] : memref<1x16xf32, #tpu.memory_space<vmem>>, vector<1x16xf32>
    %21 = vector.broadcast %20 : vector<1x16xf32> to vector<8x16xf32>
    %22 = arith.addf %19, %21 : vector<8x16xf32>
    %c0_15 = arith.constant 0 : index
    %c0_16 = arith.constant 0 : index
    %23 = vector.load %arg7[%c0_15, %c0_16] : memref<8x16xf32, #tpu.memory_space<vmem>>, vector<8x16xf32>
    tpu.vector_store %arg7[%c0_15, %c0_16], %22 {strides = array<i32>} : memref<8x16xf32, #tpu.memory_space<vmem>>, vector<8x16xf32>,
    return
  }
  func.func @transform_0(%arg0: i32) -> (i32, i32) {
    %c0_i32 = arith.constant 0 : i32
    %c0_i32_0 = arith.constant 0 : i32
    return %arg0, %c0_i32 : i32, i32
  }
  func.func @transform_1(%arg0: i32) -> (i32, i32) {
    %c0_i32 = arith.constant 0 : i32
    %c0_i32_0 = arith.constant 0 : i32
    %c0_i32_1 = arith.constant 0 : i32
    return %c0_i32, %c0_i32_0 : i32, i32
  }
  func.func @transform_2(%arg0: i32) -> (i32, i32) {
    %c0_i32 = arith.constant 0 : i32
    %c0_i32_0 = arith.constant 0 : i32
    %c0_i32_1 = arith.constant 0 : i32
    return %c0_i32, %c0_i32_0 : i32, i32
  }
  func.func @transform_3(%arg0: i32) -> (i32, i32) {
    %c0_i32 = arith.constant 0 : i32
    %c0_i32_0 = arith.constant 0 : i32
    %c0_i32_1 = arith.constant 0 : i32
    return %c0_i32, %c0_i32_0 : i32, i32
  }
  func.func @transform_4(%arg0: i32) -> (i32, i32) {
    %c0_i32 = arith.constant 0 : i32
    %c0_i32_0 = arith.constant 0 : i32
    %c0_i32_1 = arith.constant 0 : i32
    return %c0_i32, %c0_i32_0 : i32, i32
  }
  func.func @transform_5(%arg0: i32) -> (i32, i32) {
    %c0_i32 = arith.constant 0 : i32
    %c0_i32_0 = arith.constant 0 : i32
    %c0_i32_1 = arith.constant 0 : i32
    return %c0_i32, %c0_i32_0 : i32, i32
  }
  func.func @transform_6(%arg0: i32) -> (i32, i32) {
    %c0_i32 = arith.constant 0 : i32
    %c0_i32_0 = arith.constant 0 : i32
    return %arg0, %c0_i32 : i32, i32
  }
}

</mosaic_0001>

<bundles_post_ra>
// kernel: tpu_custom_call.1
= control target key start
LH: loop header
LB: loop body
LE: loop exit
PB: predicated region body
PF: predicated region fallthrough
CT: control target
= control target key end

     0   :  { %s1152_s0 = inlined_call_operand.vmem [shape: f32[16,128], index: 0, kind: input, shape index: {}]   ;;  %s1153_s1 = inlined_call_operand.vmem [shape: f32[128,4], index: 1, kind: input, shape index: {}]   ;;  %s1154_s2 = inlined_call_operand.<no memory space> [shape: f32[1,1], index: 2, kind: input, shape index: {}]   ;;  %s1155_s3 = inlined_call_operand.vmem [shape: f32[4,128], index: 3, kind: input, shape index: {}]   ;;  %s1156_s4 = inlined_call_operand.vmem [shape: f32[128,16], index: 4, kind: input, shape index: {}]   ;;  %s1157_s5 = inlined_call_operand.vmem [shape: f32[1,16], index: 5, kind: input, shape index: {}]   ;;  %s1158_s6 = inlined_call_operand.hbm [shape: f32[16,16], index: 6, kind: output, shape index: {}]  }
   0x1   :  { %11 = sst [smem:[#allocation2]] %s1154_s2 }
   0x2   :  { %12 = vsyncpa [#allocation4], 0 }
   0x3   :  { %14 = vsyncpa [#allocation4 + $0x1], 0  ;;  %s920_s23 = smov 0   ;;  %s922_s24 = smov 0  }
   0x4   :  { %s924_s25 = smov 0   ;;  %s926_s26 = smov 0  }
   0x5 LB: > { %s941_s2 = sadd.s32 4294967295, %s876_s26   ;;  %s596_s27 = sadd.s32 4294967294, %s876_s26   ;;  %s876_s26 = sphi %s926_s26, %s1164_s26   ;;  %s872_s25 = sphi %s924_s25, %s1163_s25   ;;  %s868_s24 = sphi %s922_s24, %s1162_s24   ;;  %s864_s23 = sphi %s920_s23, %s1161_s23  }
   0x6   : > { %s945_s28 = sadd.s32 1, %s876_s26   ;;  %s158_s29 = sadd.s32 1, %s872_s25 }
   0x7   : > { %s155_s30 = ssub.s32 %s876_s26, %s945_s28  ;;  %p168_p0 = scmp.ne.s32.totalorder %s872_s25, %s868_s24 }
   0x8   : > { %p156_p1 = scmp.eq.s32.totalorder %s155_s30, 0  ;;  %p169_p2 = scmp.eq.s32.totalorder %s941_s2, 1 }
   0x9   : > { %p174_p3 = scmp.ne.s32.totalorder %s868_s24, %s864_s23  ;;  %p175_p4 = scmp.eq.s32.totalorder %s596_s27, 1 }
   0xa   : > { %s956_s7 = scalar_select %p156_p1, %s872_s25, %s158_s29  }
   0xb   : > { %p958_p5 = por %p169_p2, %p168_p0  ;;  %p962_p6 = por %p175_p4, %p174_p3 }
   0xc   : > { %p599_p7 = scmp.ge.s32.totalorder %s876_s26, 1  ;;  %p215_p8 = scmp.lt.s32.totalorder %s876_s26, 3 }
   0xe   : > { %p216_p9 = pnand %p599_p7, %p215_p8 }
   0xf   : > { %v250_v0 = vld [vmem:[%s1153_s1] sm:$0xff] (!%p216_p9)  ;;  %v251_v1 = vld [vmem:[%s1153_s1 + $0x8] sm:$0xff] (!%p216_p9)  ;;  %v252_v2 = vld [vmem:[%s1153_s1 + $0x10] sm:$0xff] (!%p216_p9)  ;;  %v878_v3 = vmov (!%p216_p9), 0.0|0.0   ;;  %vm879_vm0 = vmmov (!%p216_p9), 0   ;;  %v880_v6 = vmov (!%p216_p9), 0.0  }
  0x10   : > { %219 = sbr.rel (%p216_p9) target bundleno = 1019 (0x3fb), region = 44  ;;  %720 = vmatprep.subr.bf16.mxu0 (!%p216_p9), %v878_v3  ;;  %v721_v4 = vpack.c.bf16 (!%p216_p9), %v251_v1, %v250_v0  ;;  %v253_v5 = vld [vmem:[%s1153_s1 + $0x18] sm:$0xff] (!%p216_p9)  ;;  %677 = vmatprep.mubr.msk.f32.mxu0 (!%p216_p9), %vm879_vm0, %v880_v6  ;;  %v254_v8 = vld [vmem:[%s1153_s1 + $0x20] sm:$0xff] (!%p216_p9)  ;;  %v255_v9 = vld [vmem:[%s1153_s1 + $0x28] sm:$0xff] (!%p216_p9)  ;;  %p244_p10 = scmp.lt.s32.totalorder (!%p216_p9), %s941_s2, 1  ;;  %vm337_vm1 = vcmask (!%p216_p9), 31744  }
  0x11   : > { %680 = vmatprep.subr.mxu1 (!%p216_p9), %v880_v6  ;;  %682 = vmatprep.mubr.msk.f32.mxu1 (!%p216_p9), %vm879_vm0, %v880_v6  ;;  %v724_v7 = vpack.c.bf16 (!%p216_p9), %v253_v5, %v252_v2  ;;  %v727_v10 = vpack.c.bf16 (!%p216_p9), %v255_v9, %v254_v8  ;;  %v256_v11 = vld [vmem:[%s1153_s1 + $0x30] sm:$0xff] (!%p216_p9)  ;;  %v257_v12 = vld [vmem:[%s1153_s1 + $0x38] sm:$0xff] (!%p216_p9)  ;;  %v258_v14 = vld [vmem:[%s1153_s1 + $0x40] sm:$0xff] (!%p216_p9)  ;;  %s249_s15 = sld [smem:[#allocation2]] (!%p216_p9)  ;;  %vm353_vm2 = vcmask (!%p216_p9), 1043456   ;;  %s241_s18 = sand.u32 (!%p216_p9), 1, %s868_s24  }
  0x12   : > { %722 = vmatpush3.bf16.msra.mxu0 (!%p216_p9), %v721_v4  ;;  %v730_v13 = vpack.c.bf16 (!%p216_p9), %v257_v12, %v256_v11  ;;  %v259_v15 = vld [vmem:[%s1153_s1 + $0x48] sm:$0xff] (!%p216_p9)  ;;  %v260_v17 = vld [vmem:[%s1153_s1 + $0x50] sm:$0xff] (!%p216_p9)  ;;  %v261_v18 = vld [vmem:[%s1153_s1 + $0x58] sm:$0xff] (!%p216_p9)  ;;  %s600_s19 = sshll.u32 (!%p216_p9), %s241_s18, 3  ;;  %vm521_vm3 = vcmask (!%p216_p9), 130048   ;;  %s524_s12 = scalar_lea.sflag (!%p216_p9), [#allocation4], %s241_s18 }
  0x13   : > { %723 = vmatprep.subr.bf16.mxu0 (!%p216_p9), %v878_v3  ;;  %v733_v16 = vpack.c.bf16 (!%p216_p9), %v259_v15, %v258_v14  ;;  %v736_v19 = vpack.c.bf16 (!%p216_p9), %v261_v18, %v260_v17  ;;  %v262_v20 = vld [vmem:[%s1153_s1 + $0x60] sm:$0xff] (!%p216_p9)  ;;  %v263_v21 = vld [vmem:[%s1153_s1 + $0x68] sm:$0xff] (!%p216_p9)  ;;  %v264_v23 = vld [vmem:[%s1153_s1 + $0x70] sm:$0xff] (!%p216_p9)  ;;  %s243_s27 = scalar_lea.vmem (!%p216_p9), [#allocation3], %s600_s19 }
  0x14   : > { %v739_v22 = vpack.c.bf16 (!%p216_p9), %v263_v21, %v262_v20  ;;  %v265_v24 = vld [vmem:[%s1153_s1 + $0x78] sm:$0xff] (!%p216_p9)  ;;  %v349_v37 = vld [vmem:[%s1155_s3] sm:$0xf] (!%p216_p9)  ;;  %v429_v40 = vld [vmem:[%s1156_s4 + $0x8] sm:$0xff] (!%p216_p9)  ;;  %s537_s29 = sshll.u32 (!%p216_p9), %s243_s27, 4  ;;  %s1112_s29 = int_to_ptr.vmem [resolvable:$true] %s537_s29 }
  0x15   : > { %v742_v25 = vpack.c.bf16 (!%p216_p9), %v265_v24, %v264_v23  ;;  %681 = vmatpush3.msk.msra.mxu1 (!%p216_p9), %vm353_vm2, %v349_v37  ;;  %v428_v39 = vld [vmem:[%s1156_s4] sm:$0xff] (!%p216_p9)  ;;  %v430_v44 = vld [vmem:[%s1156_s4 + $0x10] sm:$0xff] (!%p216_p9)  ;;  %v431_v45 = vld [vmem:[%s1156_s4 + $0x18] sm:$0xff] (!%p216_p9)  ;;  %s814_s13 = scalar_lea.vmem (!%p216_p9), %s1112_s29, 128 }
  0x16   : > { %725 = vmatpush3.bf16.msra.mxu0 (!%p216_p9), %v724_v7  ;;  %744 = vmatprep.subr.bf16.mxu1 (!%p216_p9), %v878_v3  ;;  %v745_v42 = vpack.c.bf16 (!%p216_p9), %v429_v40, %v428_v39  ;;  %v748_v46 = vpack.c.bf16 (!%p216_p9), %v431_v45, %v430_v44  ;;  %v432_v47 = vld [vmem:[%s1156_s4 + $0x20] sm:$0xff] (!%p216_p9)  ;;  %v433_v48 = vld [vmem:[%s1156_s4 + $0x28] sm:$0xff] (!%p216_p9)  ;;  %v434_v50 = vld [vmem:[%s1156_s4 + $0x30] sm:$0xff] (!%p216_p9)  ;;  %p815_p11 = scmp.ne.s32.totalorder (!%p216_p9), %s1112_s29, %s814_s13 }
  0x17   : > { %726 = vmatprep.subr.bf16.mxu0 %v878_v3  ;;  %s245_s22 = scalar_select %p244_p10, %s941_s2, 1  ;;  %v266_v27 = vstv %s249_s15  ;;  %v751_v49 = vpack.c.bf16 %v433_v48, %v432_v47  ;;  %v435_v51 = vld [vmem:[%s1156_s4 + $0x38] sm:$0xff]  ;;  %v436_v53 = vld [vmem:[%s1156_s4 + $0x40] sm:$0xff]  ;;  %v437_v54 = vld [vmem:[%s1156_s4 + $0x48] sm:$0xff] }
  0x18   : > { %v754_v52 = vpack.c.bf16 %v435_v51, %v434_v50  ;;  %v757_v55 = vpack.c.bf16 %v437_v54, %v436_v53  ;;  %v438_v56 = vld [vmem:[%s1156_s4 + $0x50] sm:$0xff]  ;;  %v439_v57 = vld [vmem:[%s1156_s4 + $0x58] sm:$0xff]  ;;  %v440_v59 = vld [vmem:[%s1156_s4 + $0x60] sm:$0xff]  ;;  %p816_p12 = pnand %p815_p11, %p958_p5 }
  0x19   : > { %s601_s11 = sshll.u32 %s245_s22, 3  ;;  %v760_v58 = vpack.c.bf16 %v439_v57, %v438_v56  ;;  %v441_v60 = vld [vmem:[%s1156_s4 + $0x68] sm:$0xff]  ;;  %v442_v62 = vld [vmem:[%s1156_s4 + $0x70] sm:$0xff]  ;;  %v443_v63 = vld [vmem:[%s1156_s4 + $0x78] sm:$0xff]  ;;  %s606_s22 = sshll.u32 %s941_s2, 7 }
  0x1a   : > { %728 = vmatpush3.bf16.msra.mxu0 %v727_v10  ;;  %s247_s14 = scalar_lea.vmem %s1152_s0, %s601_s11  ;;  %v763_v61 = vpack.c.bf16 %v441_v60, %v440_v59  ;;  %v766_v0 = vpack.c.bf16 %v443_v63, %v442_v62  ;;  %s1110_s11 = scalar_lea.hbm %s1158_s6, %s606_s22 }
  0x1b   : > { %729 = vmatprep.subr.bf16.mxu0 %v878_v3  ;;  %v1034_v26 = vld [vmem:[%s247_s14] sm:$0xff]  ;;  %p817_p13 = pneg %p816_p12  ;;  %s881_s2 = smov [#allocation3]  }
  0x1c   : > { %s818_s14 = sshll.u32 %s881_s2, 4  ;;  %s819_s14 = int_to_ptr.vmem [resolvable:$false] %s818_s14 }
  0x1d   : > { %s820_s15 = scalar_lea.vmem %s819_s14, 256  ;;  %p821_p0 = scmp.lt.s32.totalorder %s1112_s29, %s819_s14 }
  0x1e   : > { %731 = vmatpush3.bf16.msra.mxu0 %v730_v13  ;;  %p822_p1 = scmp.lt.s32.totalorder %s820_s15, %s814_s13 }
  0x1f   : > { %732 = vmatprep.subr.bf16.mxu0 %v878_v3 }
  0x20   : > { %p823_p2 = por %p822_p1, %p821_p0 }
  0x22   : > { %734 = vmatpush3.bf16.msra.mxu0 %v733_v16  ;;  %p824_p3 = pnand %p823_p2, %p817_p13 }
  0x23   : > { %735 = vmatprep.subr.bf16.mxu0 %v878_v3 }
  0x26   : > { %737 = vmatpush3.bf16.msra.mxu0 %v736_v19 }
  0x27   : > { %738 = vmatprep.subr.bf16.mxu0 %v878_v3 }
  0x2a   : > { %740 = vmatpush3.bf16.msra.mxu0 %v739_v22 }
  0x2b   : > { %741 = vmatprep.subr.bf16.mxu0 %v878_v3 }
  0x2e   : > { %743 = vmatpush3.bf16.msra.mxu0 %v742_v25 }
  0x31   : > { %678 = vmatmul.mubr.f32.vlgmr.msra.gmra.mrb[0].mxu0 %v1034_v26 }
 0x104   : > { %v333_v28 = vpop.f32.mrb[0].mxu0 }
 0x105   : > { %v334_v29 = vadd.f32 %v333_v28, %v266_v27  ;;  %v679_v30 = vpop.f32.mrb[1].mxu0 }
 0x107   : > { %v338_v31 = vsel %vm337_vm1, %v334_v29, -inf }
 0x108   : > { %339 = vmax.xlane.f32.xlu0 %v338_v31 }
 0x195   : > { %v340_v32 = vpop.xlane.xlu0 %339 }
 0x196   : > { %v341_v33 = vsub.f32 %v334_v29, %v340_v32 }
 0x198   : > { %v342_v34 = vmul.f32 1.442695, %v341_v33 }
 0x19a   : > { %810 = vpow2.f32 %v342_v34 }
 0x1a4   : > { %v811_v35 = vpop.eup %810 }
 0x1a5   : > { %v344_v36 = vsel %vm337_vm1, %v811_v35, 0.0 }
 0x1a6   : > { %345 = vadd.xlane.f32.xlu0 %v344_v36 }
 0x233   : > { %v346_v38 = vpop.xlane.xlu0 %345 }
 0x234   : > { %812 = vrcp.f32 %v346_v38 }
 0x23e   : > { %v813_v41 = vpop.eup %812 }
 0x23f   : > { %v348_v43 = vmul.f32 %v813_v41, %v811_v35 }
 0x241   : > { %683 = vmatmul.mubr.msk.f32.vlgmr.msra.gmra.mrb[0].mxu1 %vm337_vm1, %v348_v43 }
 0x242   : > { %746 = vmatpush3.bf16.msra.mxu1 %v745_v42  ;;  %717 = vmatprep.mubr.msk.f32.mxu1 %vm879_vm0, %v880_v6 }
 0x243   : > { %747 = vmatprep.subr.bf16.mxu1 %v878_v3 }
 0x246   : > { %749 = vmatpush3.bf16.msra.mxu1 %v748_v46 }
 0x247   : > { %750 = vmatprep.subr.bf16.mxu1 %v878_v3 }
 0x24a   : > { %752 = vmatpush3.bf16.msra.mxu1 %v751_v49 }
 0x24b   : > { %753 = vmatprep.subr.bf16.mxu1 %v878_v3 }
 0x24e   : > { %755 = vmatpush3.bf16.msra.mxu1 %v754_v52 }
 0x24f   : > { %756 = vmatprep.subr.bf16.mxu1 %v878_v3 }
 0x252   : > { %758 = vmatpush3.bf16.msra.mxu1 %v757_v55 }
 0x253   : > { %759 = vmatprep.subr.bf16.mxu1 %v878_v3 }
 0x256   : > { %761 = vmatpush3.bf16.msra.mxu1 %v760_v58 }
 0x257   : > { %762 = vmatprep.subr.bf16.mxu1 %v878_v3 }
 0x25a   : > { %764 = vmatpush3.bf16.msra.mxu1 %v763_v61 }
 0x25b   : > { %765 = vmatprep.subr.bf16.mxu1 %v878_v3  ;;  %v604_v3 = vld [vmem:[%s1157_s5] ss:$0 sm:$0xff] }
 0x25e   : > { %767 = vmatpush3.bf16.msra.mxu1 %v766_v0 }
 0x314   : > { %v423_v1 = vpop.f32.mrb[0].mxu1 }
 0x315   : > { %v427_v2 = vmul.f32 %v423_v1, %v1034_v26  ;;  %v684_v4 = vpop.f32.mrb[1].mxu1 }
 0x317   : > { %718 = vmatmul.mubr.f32.vlgmr.msra.gmra.mrb[2].mxu1 %v427_v2 }
 0x3ea   : > { %v517_v5 = vpop.f32.mrb[2].mxu1 }
 0x3eb   : > { %v518_v6 = vadd.f32 %v604_v3, %v517_v5  ;;  %v719_v7 = vpop.f32.mrb[3].mxu1 }
 0x3ed   : > { %522 = vst.msk [vmem:[%s243_s27] sm:$0xff] %vm521_vm3, %v518_v6 }
 0x3ee   : > { %827 = shalt.err (!%p824_p3)
}
 0x3ef   : > { %s828_s16 = scalar_lea.hbm %s1110_s11, 128  ;;  %s832_s19 = scalar_lea.hbm %s1158_s6, 256 }
 0x3f0   : > { %p829_p4 = scmp.ne.s32.totalorder %s1110_s11, %s828_s16  ;;  %p833_p9 = scmp.lt.u32.totalorder %s1110_s11, %s1158_s6 }
 0x3f1   : > { %p834_p10 = scmp.lt.u32.totalorder %s832_s19, %s828_s16  ;;  %p836_p12 = scmp.lt.u32.totalorder %s828_s16, %s1110_s11 }
 0x3f2   : > { %p830_p7 = pnand %p829_p4, %p958_p5 }
 0x3f3   : > { %p835_p11 = por %p834_p10, %p833_p9 }
 0x3f4   : > { %p831_p8 = pneg %p830_p7 }
 0x3f5   : > { %p837_p13 = por %p836_p12, %p835_p11 }
 0x3f7   : > { %p838_p0 = pnand %p837_p13, %p831_p8 }
 0x3f9   : > { %841 = shalt.err (!%p838_p0)
}
 0x3fa   : > { %768 = dma.vmem_to_hbm [thread:$0]  (%p958_p5), %s1112_s29, 128, %s1110_s11, %s524_s12  }
 0x3fb PF: > { %p774_p1 = scmp.ge.s32.totalorder %s876_s26, 2  ;;  %s549_s22 = sand.u32 1, %s864_s23  }
 0x3fc   : > { %s550_s27 = scalar_lea.sflag [#allocation4], %s549_s22 }
 0x3fd   : > { %p771_p2 = pnand %p774_p1, %p962_p6 }
 0x3ff   : > { %859 = dma.done.wait (!%p771_p2), %s550_s27, 128  }
 0x400   : > { %861 = vsyncadd (!%p771_p2), %s550_s27, 4294967168  ;;  %p17_p3 = scmp.ge.s32.totalorder %s945_s28, 4   ;;  %s1161_s23 = smov %s868_s24 }
 0x401   : > { %s1162_s24 = smov %s872_s25  ;;  %s1163_s25 = smov %s956_s7 }
 0x402   : > { %s1164_s26 = smov %s945_s28  ;;  %19 = sbr.rel (!%p17_p3) target bundleno = 5 (0x5), region = 79 }
 0x409   :  { %555 = vsyncpa [#allocation4], 1 }
 0x40a   :  { %557 = vsyncpa [#allocation4 + $0x1], 1 }

</bundles_post_ra>
